<compile_context>
chip_gen: v7x
topology: tpu7x:2x2x1
jax: 0.10.0
libtpu: 0.0.40
codegen_flags: <defaults>
</compile_context>

<pallas_src>
import jax
import jax.numpy as jnp
from jax.experimental import pallas as pl
from jax.experimental.pallas import tpu as pltpu


def _round_up(x, m):
    return (x + m - 1) // m * m


def _cdiv(a, b):
    return -(-a // b)


# ---------------------------------------------------------------------------
# Fused Pallas kernel
# ---------------------------------------------------------------------------

def _make_fused_kernel(relu_flags, seg_bounds, total_t):
    """relu_flags[k] -> apply ReLU after linear k.  The last linear is the
    (folded) multi-task head; per-task softmax runs on static lane segments."""
    n_layers = len(relu_flags)

    def kernel(x_ref, *refs):
        o_ref = refs[-1]
        params = refs[:-1]                    # w0, b0, ..., w_{L-1}, b_{L-1}

        h = x_ref[...]
        for k in range(n_layers):
            w = params[2 * k][...]
            b = params[2 * k + 1][...]
            h = jnp.dot(h.astype(w.dtype), w,
                        preferred_element_type=jnp.float32) + b
            if relu_flags[k]:
                h = jnp.maximum(h, 0.0)
        logits = h                            # (TB, out_pad) f32

        col = jax.lax.broadcasted_iota(jnp.int32, logits.shape, 1)
        neg = jnp.float32(-1e30)

        # Combined per-segment max (static masks) -> a single exp for the tile.
        m_comb = jnp.zeros_like(logits)
        for (s, e) in seg_bounds:
            mask = (col >= s) & (col < e)
            m = jnp.max(jnp.where(mask, logits, neg), axis=-1, keepdims=True)
            m_comb = jnp.where(mask, m, m_comb)
        valid = col < total_t
        # Mask BEFORE the exp so out-of-segment / padded lanes underflow to 0
        # instead of overflowing to inf.
        exps = jnp.exp(jnp.where(valid, logits - m_comb, neg))

        out = jnp.zeros_like(logits)
        for (s, e) in seg_bounds:
            mask = (col >= s) & (col < e)
            denom = jnp.sum(jnp.where(mask, exps, 0.0), axis=-1, keepdims=True)
            # Exact reciprocal keeps per-task probs summing to 1 within ~1e-6.
            # TODO(synk): pl.reciprocal(denom, approx=True) if looser sums OK.
            out = jnp.where(mask, exps * pl.reciprocal(denom, approx=False), out)

        o_ref[...] = out.astype(o_ref.dtype)

    return kernel


# ---------------------------------------------------------------------------
# Forward builder (param prep hoisted, per-call path is one jitted function)
# ---------------------------------------------------------------------------

def make_georgiev_forward(hidden_params, task_params, *,
                          compute_dtype=jnp.float32):
    """Builds a jitted forward: x (B, C, H, W) -> tuple of (B, t) softmax probs.

    hidden_params: [(w (in,out), b (1,out)), ...]   (torch weight.T layout)
    task_params:   [(w (hidden,t), b (1,t)), ...]
    """
    n_hidden = len(hidden_params)
    assert n_hidden >= 1
    output_sizes = tuple(int(w.shape[1]) for (w, _) in task_params)
    total_t = int(sum(output_sizes))
    out_pad = _round_up(total_t, 128)

    hp = jax.lax.Precision.HIGHEST
    wh = jnp.concatenate([w for (w, _) in task_params], axis=1).astype(jnp.float32)
    bh = jnp.concatenate([b for (_, b) in task_params], axis=1).astype(jnp.float32)

    # Fold the last hidden linear (no ReLU follows it) into the head.
    if n_hidden >= 2:
        w_last, b_last = hidden_params[-1]
        w_head = jnp.dot(w_last.astype(jnp.float32), wh, precision=hp)
        b_head = jnp.dot(b_last.astype(jnp.float32), wh, precision=hp) + bh
        pre_layers = list(hidden_params[:-1])
        relu_flags = (True,) * (n_hidden - 1) + (False,)
    else:
        # Single hidden layer: keep it separate so the head stays (hidden, out).
        w_head, b_head = wh, bh
        pre_layers = list(hidden_params)
        relu_flags = (False,) * n_hidden + (False,)

    w_head = jnp.pad(w_head, ((0, 0), (0, out_pad - total_t)))
    b_head = jnp.pad(b_head, ((0, 0), (0, out_pad - total_t)))

    layer_params = []
    for (w, b) in pre_layers:
        layer_params += [w.astype(compute_dtype), b.astype(jnp.float32)]
    layer_params += [w_head.astype(compute_dtype), b_head.astype(jnp.float32)]
    layer_params = tuple(layer_params)

    seg_bounds = []
    off = 0
    for t in output_sizes:
        seg_bounds.append((off, off + t))
        off += t
    seg_bounds = tuple(seg_bounds)

    kernel = _make_fused_kernel(relu_flags, seg_bounds, total_t)

    itemsize = 2 if compute_dtype in (jnp.bfloat16, jnp.float16) else 4
    sub = 8 * (4 // itemsize)               # sublane multiple: 8 f32 / 16 bf16

    # Per-generation VMEM budget (v7x: 64 MiB physical per TC; v5e/v6e: 128).
    try:
        vmem_cap = int(pltpu.get_tpu_info().vmem_capacity_bytes)
    except Exception:
        vmem_cap = 64 * 1024 * 1024
    vmem_budget = min(vmem_cap * 3 // 4, 100 * 1024 * 1024)

    @jax.jit
    def forward(x, *params):
        B = x.shape[0]
        h0 = x.reshape(B, -1).astype(compute_dtype)      # flatten(1)
        in_size = h0.shape[1]

        # Resident (double-buffered, lane/sublane padded) weight footprint.
        resident = 0
        for p in params:
            r, c = p.shape
            resident += 2 * _round_up(r, sub) * _round_up(c, 128) * p.dtype.itemsize
        row_bytes = 2 * (in_size * h0.dtype.itemsize + out_pad * 4)
        tb_vmem = max(sub, ((vmem_budget - resident) // row_bytes) // sub * sub)

        b8 = _round_up(B, sub)
        if b8 <= sub:
            tb_target = b8
        else:
            # >=2 tiles so v7x's second TensorCore gets work; ~8 tiles at large
            # batch for DMA/compute overlap; keep tiles >=256 rows so the
            # ~0.35us/step overhead stays amortized.
            tb_target = max(min(256, _round_up(_cdiv(b8, 2), sub)),
                            _round_up(_cdiv(b8, 8), sub))
        tb_target = min(tb_target, tb_vmem, b8)

        # Largest multiple-of-`sub` divisor of b8 not exceeding the target, so
        # B_pad == b8 and the wrapper-side pad is at most sub-1 rows (no big
        # padded copy of the activations).
        TB = sub
        d = sub
        while d <= tb_target:
            if b8 % d == 0:
                TB = d
            d += sub

        B_pad = b8
        if B_pad != B:
            h0 = jnp.pad(h0, ((0, B_pad - B), (0, 0)))

        in_specs = [pl.BlockSpec((TB, in_size), lambda i: (i, 0))]
        for p in params:
            # Weights/biases stay resident across the batch grid.
            # TODO(synk): pipeline_mode=pl.Buffered(1) on these invariant specs
            # would halve their VMEM buffers (matters for very large in_size).
            in_specs.append(pl.BlockSpec(p.shape, lambda i: (0, 0)))

        out = pl.pallas_call(
            kernel,
            out_shape=jax.ShapeDtypeStruct((B_pad, out_pad), jnp.float32),
            grid_spec=pltpu.PrefetchScalarGridSpec(
                num_scalar_prefetch=0,
                grid=(B_pad // TB,),
                in_specs=in_specs,
                out_specs=pl.BlockSpec((TB, out_pad), lambda i: (i, 0)),
            ),
            compiler_params=pltpu.CompilerParams(
                dimension_semantics=("parallel",),
                vmem_limit_bytes=int(vmem_budget),
            ),
        )(h0, *params)

        # Slice the lane-dense slab back into per-task (B, t) outputs.
        return tuple(out[:B, s:e] for (s, e) in seg_bounds)

    # TODO(synk): for very large in_size add a K-reduction grid axis for the
    # first matmul (grid=(B_pad//TB, in_size//TK) + f32 VMEM accumulator) so
    # the full (in_size, hidden) weight and (TB, in_size) tile need not be
    # simultaneously resident in VMEM.

    def apply(x):
        return forward(x, *layer_params)

    return apply


# ---------------------------------------------------------------------------
# Parameter construction (deterministic xavier-uniform, zero bias) + reference
# ---------------------------------------------------------------------------

def _xavier_uniform(key, fan_in, fan_out):
    bound = jnp.sqrt(6.0 / (fan_in + fan_out))
    # stored already transposed: (in, out), equivalent to torch weight.T
    return jax.random.uniform(
        key, (fan_in, fan_out), minval=-bound, maxval=bound, dtype=jnp.float32
    )


def init_params(key, input_size, hidden_size, n_hidden, output_sizes):
    h_sizes = [input_size] + [hidden_size] * n_hidden
    hidden_params = []
    for k in range(len(h_sizes) - 1):
        key, sub = jax.random.split(key)
        w = _xavier_uniform(sub, h_sizes[k], h_sizes[k + 1])
        b = jnp.zeros((1, h_sizes[k + 1]), jnp.float32)
        hidden_params.append((w, b))
    task_params = []
    for t in output_sizes:
        key, sub = jax.random.split(key)
        w = _xavier_uniform(sub, hidden_size, t)
        b = jnp.zeros((1, t), jnp.float32)
        task_params.append((w, b))
    return hidden_params, task_params


def _reference_forward(x, hidden_params, task_params):
    B = x.shape[0]
    h = x.reshape(B, -1).astype(jnp.float32)
    hp = jax.lax.Precision.HIGHEST
    for (w, b) in hidden_params[:-1]:
        h = jnp.maximum(jnp.dot(h, w, precision=hp) + b, 0.0)
    w, b = hidden_params[-1]
    h = jnp.dot(h, w, precision=hp) + b
    outs = []
    for (wt, bt) in task_params:
        logits = jnp.dot(h, wt, precision=hp) + bt
        outs.append(jax.nn.softmax(logits, axis=-1))
    return tuple(outs)


# ---------------------------------------------------------------------------
# Main
# ---------------------------------------------------------------------------

if __name__ == "__main__":
    key = jax.random.PRNGKey(0)

    # Small shapes consistent with the module's forward (image-like NCHW input)
    B, C, H, W = 2, 4, 16, 16
    input_size = C * H * W          # 1024 after flatten(1)
    hidden_size = 32
    n_hidden = 3
    output_sizes = (10, 5)

    key, xkey, pkey = jax.random.split(key, 3)
    x = jax.random.normal(xkey, (B, C, H, W), dtype=jnp.float32)

    hidden_params, task_params = init_params(
        pkey, input_size, hidden_size, n_hidden, output_sizes
    )

    forward = make_georgiev_forward(hidden_params, task_params)
    outs = forward(x)
    outs = jax.block_until_ready(outs)

    # sanity: shapes, softmax normalization, and match against pure-JAX ref
    refs = _reference_forward(x, hidden_params, task_params)
    assert len(outs) == len(output_sizes)
    for o, r, t in zip(outs, refs, output_sizes):
        assert o.shape == (B, t)
        assert jnp.allclose(jnp.sum(o, axis=-1), 1.0, atol=1e-5)
        assert jnp.allclose(o, r, atol=1e-3, rtol=1e-3)

    print("KERNEL_OK")
</pallas_src>

<mosaic_0001>
module attributes {stable_mosaic.version = 11 : i64} {
  func.func @kernel(%arg0: i32, %arg1: memref<8x1024xf32, #tpu.memory_space<vmem>>, %arg2: memref<1024x32xf32, #tpu.memory_space<vmem>>, %arg3: memref<1x32xf32, #tpu.memory_space<vmem>>, %arg4: memref<32x32xf32, #tpu.memory_space<vmem>>, %arg5: memref<1x32xf32, #tpu.memory_space<vmem>>, %arg6: memref<32x128xf32, #tpu.memory_space<vmem>>, %arg7: memref<1x128xf32, #tpu.memory_space<vmem>>, %arg8: memref<8x128xf32, #tpu.memory_space<vmem>>) attributes {dimension_semantics = [#tpu.dimension_semantics<parallel>], iteration_bounds = array<i64: 1>, scalar_prefetch = 0 : i64, scratch_operands = 0 : i64, tpu.core_type = #tpu.core_type<tc>, window_params = [{transform_indices = @transform_0, window_bounds = array<i64: 8, 1024>}, {pipeline_mode = #tpu.pipeline_mode<synchronous>, transform_indices = @transform_1, window_bounds = array<i64: 1024, 32>}, {pipeline_mode = #tpu.pipeline_mode<synchronous>, transform_indices = @transform_2, window_bounds = array<i64: 1, 32>}, {pipeline_mode = #tpu.pipeline_mode<synchronous>, transform_indices = @transform_3, window_bounds = array<i64: 32, 32>}, {pipeline_mode = #tpu.pipeline_mode<synchronous>, transform_indices = @transform_4, window_bounds = array<i64: 1, 32>}, {pipeline_mode = #tpu.pipeline_mode<synchronous>, transform_indices = @transform_5, window_bounds = array<i64: 32, 128>}, {pipeline_mode = #tpu.pipeline_mode<synchronous>, transform_indices = @transform_6, window_bounds = array<i64: 1, 128>}, {transform_indices = @transform_7, window_bounds = array<i64: 8, 128>}]} {
    %c0 = arith.constant 0 : index
    %c0_0 = arith.constant 0 : index
    %0 = vector.load %arg1[%c0, %c0_0] : memref<8x1024xf32, #tpu.memory_space<vmem>>, vector<8x1024xf32>
    %c0_1 = arith.constant 0 : index
    %c0_2 = arith.constant 0 : index
    %1 = vector.load %arg2[%c0_1, %c0_2] : memref<1024x32xf32, #tpu.memory_space<vmem>>, vector<1024x32xf32>
    %c0_3 = arith.constant 0 : index
    %c0_4 = arith.constant 0 : index
    %2 = vector.load %arg3[%c0_3, %c0_4] : memref<1x32xf32, #tpu.memory_space<vmem>>, vector<1x32xf32>
    %cst = arith.constant dense<0.000000e+00> : vector<8x32xf32>
    %3 = tpu.matmul %0, %1, %cst {dimension_numbers = #tpu.dot_dimension_numbers<[1], [0], [0], [1], [0, 0, 1, 1], [], []>} : vector<8x1024xf32>, vector<1024x32xf32>, vector<8x32xf32> -> vector<8x32xf32>
    %4 = vector.broadcast %2 : vector<1x32xf32> to vector<8x32xf32>
    %5 = arith.addf %3, %4 : vector<8x32xf32>
    %cst_5 = arith.constant 0.000000e+00 : f32
    %6 = vector.broadcast %cst_5 : f32 to vector<8x32xf32>
    %7 = arith.maximumf %5, %6 : vector<8x32xf32>
    %c0_6 = arith.constant 0 : index
    %c0_7 = arith.constant 0 : index
    %8 = vector.load %arg4[%c0_6, %c0_7] : memref<32x32xf32, #tpu.memory_space<vmem>>, vector<32x32xf32>
    %c0_8 = arith.constant 0 : index
    %c0_9 = arith.constant 0 : index
    %9 = vector.load %arg5[%c0_8, %c0_9] : memref<1x32xf32, #tpu.memory_space<vmem>>, vector<1x32xf32>
    %cst_10 = arith.constant dense<0.000000e+00> : vector<8x32xf32>
    %10 = tpu.matmul %7, %8, %cst_10 {dimension_numbers = #tpu.dot_dimension_numbers<[1], [0], [0], [1], [0, 0, 1, 1], [], []>} : vector<8x32xf32>, vector<32x32xf32>, vector<8x32xf32> -> vector<8x32xf32>
    %11 = vector.broadcast %9 : vector<1x32xf32> to vector<8x32xf32>
    %12 = arith.addf %10, %11 : vector<8x32xf32>
    %cst_11 = arith.constant 0.000000e+00 : f32
    %13 = vector.broadcast %cst_11 : f32 to vector<8x32xf32>
    %14 = arith.maximumf %12, %13 : vector<8x32xf32>
    %c0_12 = arith.constant 0 : index
    %c0_13 = arith.constant 0 : index
    %15 = vector.load %arg6[%c0_12, %c0_13] : memref<32x128xf32, #tpu.memory_space<vmem>>, vector<32x128xf32>
    %c0_14 = arith.constant 0 : index
    %c0_15 = arith.constant 0 : index
    %16 = vector.load %arg7[%c0_14, %c0_15] : memref<1x128xf32, #tpu.memory_space<vmem>>, vector<1x128xf32>
    %cst_16 = arith.constant dense<0.000000e+00> : vector<8x128xf32>
    %17 = tpu.matmul %14, %15, %cst_16 {dimension_numbers = #tpu.dot_dimension_numbers<[1], [0], [0], [1], [0, 0, 1, 1], [], []>} : vector<8x32xf32>, vector<32x128xf32>, vector<8x128xf32> -> vector<8x128xf32>
    %18 = vector.broadcast %16 : vector<1x128xf32> to vector<8x128xf32>
    %19 = arith.addf %17, %18 : vector<8x128xf32>
    %20 = tpu.iota {dimensions = array<i32: 1>} : vector<8x128xi32>
    %cst_17 = arith.constant 0.000000e+00 : f32
    %21 = vector.broadcast %cst_17 : f32 to vector<8x128xf32>
    %c0_i32 = arith.constant 0 : i32
    %22 = vector.broadcast %c0_i32 : i32 to vector<8x128xi32>
    %23 = arith.cmpi sge, %20, %22 : vector<8x128xi32>
    %c10_i32 = arith.constant 10 : i32
    %24 = vector.broadcast %c10_i32 : i32 to vector<8x128xi32>
    %25 = arith.cmpi slt, %20, %24 : vector<8x128xi32>
    %26 = arith.andi %23, %25 : vector<8x128xi1>
    %cst_18 = arith.constant -1.000000e+30 : f32
    %27 = vector.broadcast %cst_18 : f32 to vector<8x128xf32>
    %28 = arith.select %26, %19, %27 : vector<8x128xi1>, vector<8x128xf32>
    %cst_19 = arith.constant dense<0xFF800000> : vector<8xf32>
    %29 = vector.multi_reduction <maximumf>, %28, %cst_19 [1] : vector<8x128xf32> to vector<8xf32>
    %30 = vector.shape_cast %29 : vector<8xf32> to vector<8x1xf32>
    %31 = vector.shape_cast %30 : vector<8x1xf32> to vector<8x1xf32>
    %32 = vector.broadcast %31 : vector<8x1xf32> to vector<8x128xf32>
    %33 = arith.select %26, %32, %21 : vector<8x128xi1>, vector<8x128xf32>
    %c10_i32_20 = arith.constant 10 : i32
    %34 = vector.broadcast %c10_i32_20 : i32 to vector<8x128xi32>
    %35 = arith.cmpi sge, %20, %34 : vector<8x128xi32>
    %c15_i32 = arith.constant 15 : i32
    %36 = vector.broadcast %c15_i32 : i32 to vector<8x128xi32>
    %37 = arith.cmpi slt, %20, %36 : vector<8x128xi32>
    %38 = arith.andi %35, %37 : vector<8x128xi1>
    %cst_21 = arith.constant -1.000000e+30 : f32
    %39 = vector.broadcast %cst_21 : f32 to vector<8x128xf32>
    %40 = arith.select %38, %19, %39 : vector<8x128xi1>, vector<8x128xf32>
    %cst_22 = arith.constant dense<0xFF800000> : vector<8xf32>
    %41 = vector.multi_reduction <maximumf>, %40, %cst_22 [1] : vector<8x128xf32> to vector<8xf32>
    %42 = vector.shape_cast %41 : vector<8xf32> to vector<8x1xf32>
    %43 = vector.shape_cast %42 : vector<8x1xf32> to vector<8x1xf32>
    %44 = vector.broadcast %43 : vector<8x1xf32> to vector<8x128xf32>
    %45 = arith.select %38, %44, %33 : vector<8x128xi1>, vector<8x128xf32>
    %c15_i32_23 = arith.constant 15 : i32
    %46 = vector.broadcast %c15_i32_23 : i32 to vector<8x128xi32>
    %47 = arith.cmpi slt, %20, %46 : vector<8x128xi32>
    %48 = arith.subf %19, %45 : vector<8x128xf32>
    %cst_24 = arith.constant -1.000000e+30 : f32
    %49 = vector.broadcast %cst_24 : f32 to vector<8x128xf32>
    %50 = arith.select %47, %48, %49 : vector<8x128xi1>, vector<8x128xf32>
    %51 = math.exp %50 : vector<8x128xf32>
    %cst_25 = arith.constant 0.000000e+00 : f32
    %52 = vector.broadcast %cst_25 : f32 to vector<8x128xf32>
    %c0_i32_26 = arith.constant 0 : i32
    %53 = vector.broadcast %c0_i32_26 : i32 to vector<8x128xi32>
    %54 = arith.cmpi sge, %20, %53 : vector<8x128xi32>
    %c10_i32_27 = arith.constant 10 : i32
    %55 = vector.broadcast %c10_i32_27 : i32 to vector<8x128xi32>
    %56 = arith.cmpi slt, %20, %55 : vector<8x128xi32>
    %57 = arith.andi %54, %56 : vector<8x128xi1>
    %cst_28 = arith.constant 0.000000e+00 : f32
    %58 = vector.broadcast %cst_28 : f32 to vector<8x128xf32>
    %59 = arith.select %57, %51, %58 : vector<8x128xi1>, vector<8x128xf32>
    %cst_29 = arith.constant dense<0.000000e+00> : vector<8xf32>
    %60 = vector.multi_reduction <add>, %59, %cst_29 [1] : vector<8x128xf32> to vector<8xf32>
    %61 = vector.shape_cast %60 : vector<8xf32> to vector<8x1xf32>
    %62 = tpu.reciprocal %61 : vector<8x1xf32> -> vector<8x1xf32>
    %63 = vector.broadcast %62 : vector<8x1xf32> to vector<8x128xf32>
    %64 = arith.mulf %51, %63 : vector<8x128xf32>
    %65 = arith.select %57, %64, %52 : vector<8x128xi1>, vector<8x128xf32>
    %c10_i32_30 = arith.constant 10 : i32
    %66 = vector.broadcast %c10_i32_30 : i32 to vector<8x128xi32>
    %67 = arith.cmpi sge, %20, %66 : vector<8x128xi32>
    %c15_i32_31 = arith.constant 15 : i32
    %68 = vector.broadcast %c15_i32_31 : i32 to vector<8x128xi32>
    %69 = arith.cmpi slt, %20, %68 : vector<8x128xi32>
    %70 = arith.andi %67, %69 : vector<8x128xi1>
    %cst_32 = arith.constant 0.000000e+00 : f32
    %71 = vector.broadcast %cst_32 : f32 to vector<8x128xf32>
    %72 = arith.select %70, %51, %71 : vector<8x128xi1>, vector<8x128xf32>
    %cst_33 = arith.constant dense<0.000000e+00> : vector<8xf32>
    %73 = vector.multi_reduction <add>, %72, %cst_33 [1] : vector<8x128xf32> to vector<8xf32>
    %74 = vector.shape_cast %73 : vector<8xf32> to vector<8x1xf32>
    %75 = tpu.reciprocal %74 : vector<8x1xf32> -> vector<8x1xf32>
    %76 = vector.broadcast %75 : vector<8x1xf32> to vector<8x128xf32>
    %77 = arith.mulf %51, %76 : vector<8x128xf32>
    %78 = arith.select %70, %77, %65 : vector<8x128xi1>, vector<8x128xf32>
    %c0_34 = arith.constant 0 : index
    %c0_35 = arith.constant 0 : index
    %79 = vector.load %arg8[%c0_34, %c0_35] : memref<8x128xf32, #tpu.memory_space<vmem>>, vector<8x128xf32>
    tpu.vector_store %arg8[%c0_34, %c0_35], %78 {strides = array<i32>} : memref<8x128xf32, #tpu.memory_space<vmem>>, vector<8x128xf32>,
    return
  }
  func.func @transform_0(%arg0: i32) -> (i32, i32) {
    %c0_i32 = arith.constant 0 : i32
    %c0_i32_0 = arith.constant 0 : i32
    return %arg0, %c0_i32 : i32, i32
  }
  func.func @transform_1(%arg0: i32) -> (i32, i32) {
    %c0_i32 = arith.constant 0 : i32
    %c0_i32_0 = arith.constant 0 : i32
    %c0_i32_1 = arith.constant 0 : i32
    return %c0_i32, %c0_i32_0 : i32, i32
  }
  func.func @transform_2(%arg0: i32) -> (i32, i32) {
    %c0_i32 = arith.constant 0 : i32
    %c0_i32_0 = arith.constant 0 : i32
    %c0_i32_1 = arith.constant 0 : i32
    return %c0_i32, %c0_i32_0 : i32, i32
  }
  func.func @transform_3(%arg0: i32) -> (i32, i32) {
    %c0_i32 = arith.constant 0 : i32
    %c0_i32_0 = arith.constant 0 : i32
    %c0_i32_1 = arith.constant 0 : i32
    return %c0_i32, %c0_i32_0 : i32, i32
  }
  func.func @transform_4(%arg0: i32) -> (i32, i32) {
    %c0_i32 = arith.constant 0 : i32
    %c0_i32_0 = arith.constant 0 : i32
    %c0_i32_1 = arith.constant 0 : i32
    return %c0_i32, %c0_i32_0 : i32, i32
  }
  func.func @transform_5(%arg0: i32) -> (i32, i32) {
    %c0_i32 = arith.constant 0 : i32
    %c0_i32_0 = arith.constant 0 : i32
    %c0_i32_1 = arith.constant 0 : i32
    return %c0_i32, %c0_i32_0 : i32, i32
  }
  func.func @transform_6(%arg0: i32) -> (i32, i32) {
    %c0_i32 = arith.constant 0 : i32
    %c0_i32_0 = arith.constant 0 : i32
    %c0_i32_1 = arith.constant 0 : i32
    return %c0_i32, %c0_i32_0 : i32, i32
  }
  func.func @transform_7(%arg0: i32) -> (i32, i32) {
    %c0_i32 = arith.constant 0 : i32
    %c0_i32_0 = arith.constant 0 : i32
    return %arg0, %c0_i32 : i32, i32
  }
}

</mosaic_0001>

<bundles_post_ra>
// kernel: forward.1
= control target key start
LH: loop header
LB: loop body
LE: loop exit
PB: predicated region body
PF: predicated region fallthrough
CT: control target
= control target key end

     0   :  { %vm984_vm0 = vmmov 0   ;;  %vm461_vm1 = vcmask 261120   ;;  %s1486_s1 = inlined_call_operand.vmem [shape: f32[1024,32], index: 1, kind: input, shape index: {}]   ;;  %s1487_s0 = inlined_call_operand.vmem [shape: f32[8,1024], index: 0, kind: input, shape index: {}]   ;;  %s1488_s3 = inlined_call_operand.vmem [shape: f32[32,32], index: 3, kind: input, shape index: {}]   ;;  %s1489_s5 = inlined_call_operand.vmem [shape: f32[32,128], index: 5, kind: input, shape index: {}]   ;;  %s1490_s2 = inlined_call_operand.vmem [shape: f32[1,32], index: 2, kind: input, shape index: {}]   ;;  %s1491_s4 = inlined_call_operand.vmem [shape: f32[1,32], index: 4, kind: input, shape index: {}]   ;;  %s1492_s6 = inlined_call_operand.vmem [shape: f32[1,128], index: 6, kind: input, shape index: {}]   ;;  %s1493_s7 = inlined_call_operand.vmem [shape: f32[8,128], index: 7, kind: output, shape index: {}]  }
   0x1   :  { %v50_v0 = vld [vmem:[%s1486_s1 + $0x80] sm:$0xff]  ;;  %v51_v1 = vld [vmem:[%s1486_s1 + $0x88] sm:$0xff]  ;;  %v52_v11 = vld [vmem:[%s1486_s1 + $0x90] sm:$0xff] }
   0x2   :  { %v34_v2 = vld [vmem:[%s1486_s1] sm:$0xff]  ;;  %v834_v3 = vpack.c.bf16 %v51_v1, %v50_v0  ;;  %v35_v4 = vld [vmem:[%s1486_s1 + $0x8] sm:$0xff]  ;;  %v53_v13 = vld [vmem:[%s1486_s1 + $0x98] sm:$0xff] }
   0x3   :  { %v82_v5 = vld [vmem:[%s1486_s1 + $0x180] sm:$0xff]  ;;  %v83_v6 = vld [vmem:[%s1486_s1 + $0x188] sm:$0xff]  ;;  %v836_v7 = vpack.c.bf16 %v35_v4, %v34_v2  ;;  %v36_v14 = vld [vmem:[%s1486_s1 + $0x10] sm:$0xff]  ;;  %v838_v16 = vpack.c.bf16 %v53_v13, %v52_v11 }
   0x4   :  { %v866_v8 = vpack.c.bf16 %v83_v6, %v82_v5  ;;  %v66_v9 = vld [vmem:[%s1486_s1 + $0x100] sm:$0xff]  ;;  %v67_v10 = vld [vmem:[%s1486_s1 + $0x108] sm:$0xff]  ;;  %835 = vmatprep.subr.bf16.mxu0 %v834_v3  ;;  %v37_v15 = vld [vmem:[%s1486_s1 + $0x18] sm:$0xff] }
   0x5   :  { %v868_v12 = vpack.c.bf16 %v67_v10, %v66_v9  ;;  %837 = vmatpush3.bf16.msra.mxu0 %v836_v7  ;;  %v840_v17 = vpack.c.bf16 %v37_v15, %v36_v14  ;;  %v84_v18 = vld [vmem:[%s1486_s1 + $0x190] sm:$0xff]  ;;  %v85_v19 = vld [vmem:[%s1486_s1 + $0x198] sm:$0xff]  ;;  %v54_v23 = vld [vmem:[%s1486_s1 + $0xa0] sm:$0xff] }
   0x6   :  { %867 = vmatprep.subr.bf16.mxu1 %v866_v8  ;;  %v68_v20 = vld [vmem:[%s1486_s1 + $0x110] sm:$0xff]  ;;  %v870_v21 = vpack.c.bf16 %v85_v19, %v84_v18  ;;  %v69_v22 = vld [vmem:[%s1486_s1 + $0x118] sm:$0xff]  ;;  %v55_v24 = vld [vmem:[%s1486_s1 + $0xa8] sm:$0xff]  ;;  %839 = vmatprep.subr.bf16.mxu0 %v838_v16 }
   0x7   :  { %869 = vmatpush3.bf16.msra.mxu1 %v868_v12  ;;  %v872_v25 = vpack.c.bf16 %v69_v22, %v68_v20  ;;  %v842_v26 = vpack.c.bf16 %v55_v24, %v54_v23  ;;  %v38_v27 = vld [vmem:[%s1486_s1 + $0x20] sm:$0xff]  ;;  %v39_v28 = vld [vmem:[%s1486_s1 + $0x28] sm:$0xff]  ;;  %v56_v35 = vld [vmem:[%s1486_s1 + $0xb0] sm:$0xff] }
   0x8   :  { %v86_v29 = vld [vmem:[%s1486_s1 + $0x1a0] sm:$0xff]  ;;  %871 = vmatprep.subr.bf16.mxu1 %v870_v21  ;;  %v87_v30 = vld [vmem:[%s1486_s1 + $0x1a8] sm:$0xff]  ;;  %v844_v33 = vpack.c.bf16 %v39_v28, %v38_v27  ;;  %v57_v36 = vld [vmem:[%s1486_s1 + $0xb8] sm:$0xff] }
   0x9   :  { %v70_v31 = vld [vmem:[%s1486_s1 + $0x120] sm:$0xff]  ;;  %v71_v32 = vld [vmem:[%s1486_s1 + $0x128] sm:$0xff]  ;;  %841 = vmatpush3.bf16.msra.mxu0 %v840_v17  ;;  %v874_v34 = vpack.c.bf16 %v87_v30, %v86_v29  ;;  %v40_v37 = vld [vmem:[%s1486_s1 + $0x30] sm:$0xff]  ;;  %v846_v39 = vpack.c.bf16 %v57_v36, %v56_v35 }
   0xa   :  { %843 = vmatprep.subr.bf16.mxu0 %v842_v26  ;;  %v876_v38 = vpack.c.bf16 %v71_v32, %v70_v31  ;;  %v41_v40 = vld [vmem:[%s1486_s1 + $0x38] sm:$0xff]  ;;  %v88_v41 = vld [vmem:[%s1486_s1 + $0x1b0] sm:$0xff]  ;;  %v58_v46 = vld [vmem:[%s1486_s1 + $0xc0] sm:$0xff] }
   0xb   :  { %873 = vmatpush3.bf16.msra.mxu1 %v872_v25  ;;  %v89_v42 = vld [vmem:[%s1486_s1 + $0x1b8] sm:$0xff]  ;;  %v72_v44 = vld [vmem:[%s1486_s1 + $0x130] sm:$0xff]  ;;  %v59_v47 = vld [vmem:[%s1486_s1 + $0xc8] sm:$0xff]  ;;  %v848_v48 = vpack.c.bf16 %v41_v40, %v40_v37 }
   0xc   :  { %875 = vmatprep.subr.bf16.mxu1 %v874_v34  ;;  %v878_v43 = vpack.c.bf16 %v89_v42, %v88_v41  ;;  %v73_v45 = vld [vmem:[%s1486_s1 + $0x138] sm:$0xff]  ;;  %v90_v49 = vld [vmem:[%s1486_s1 + $0x1c0] sm:$0xff]  ;;  %v91_v50 = vld [vmem:[%s1486_s1 + $0x1c8] sm:$0xff]  ;;  %v850_v52 = vpack.c.bf16 %v59_v47, %v58_v46 }
   0xd   :  { %845 = vmatpush3.bf16.msra.mxu0 %v844_v33  ;;  %v880_v51 = vpack.c.bf16 %v73_v45, %v72_v44  ;;  %v42_v53 = vld [vmem:[%s1486_s1 + $0x40] sm:$0xff]  ;;  %v43_v54 = vld [vmem:[%s1486_s1 + $0x48] sm:$0xff]  ;;  %v882_v56 = vpack.c.bf16 %v91_v50, %v90_v49  ;;  %v60_v58 = vld [vmem:[%s1486_s1 + $0xd0] sm:$0xff] }
   0xe   :  { %847 = vmatprep.subr.bf16.mxu0 %v846_v39  ;;  %v74_v55 = vld [vmem:[%s1486_s1 + $0x140] sm:$0xff]  ;;  %v75_v57 = vld [vmem:[%s1486_s1 + $0x148] sm:$0xff]  ;;  %v61_v59 = vld [vmem:[%s1486_s1 + $0xd8] sm:$0xff]  ;;  %v852_v62 = vpack.c.bf16 %v43_v54, %v42_v53 }
   0xf   :  { %877 = vmatpush3.bf16.msra.mxu1 %v876_v38  ;;  %v92_v60 = vld [vmem:[%s1486_s1 + $0x1d0] sm:$0xff]  ;;  %v93_v61 = vld [vmem:[%s1486_s1 + $0x1d8] sm:$0xff]  ;;  %v884_v63 = vpack.c.bf16 %v75_v57, %v74_v55  ;;  %v854_v0 = vpack.c.bf16 %v61_v59, %v60_v58  ;;  %v62_v6 = vld [vmem:[%s1486_s1 + $0xe0] sm:$0xff] }
  0x10   :  { %879 = vmatprep.subr.bf16.mxu1 %v878_v43  ;;  %v44_v1 = vld [vmem:[%s1486_s1 + $0x50] sm:$0xff]  ;;  %v45_v2 = vld [vmem:[%s1486_s1 + $0x58] sm:$0xff]  ;;  %v886_v4 = vpack.c.bf16 %v93_v61, %v92_v60  ;;  %v63_v7 = vld [vmem:[%s1486_s1 + $0xe8] sm:$0xff] }
  0x11   :  { %849 = vmatpush3.bf16.msra.mxu0 %v848_v48  ;;  %v76_v3 = vld [vmem:[%s1486_s1 + $0x150] sm:$0xff]  ;;  %v77_v5 = vld [vmem:[%s1486_s1 + $0x158] sm:$0xff]  ;;  %v94_v8 = vld [vmem:[%s1486_s1 + $0x1e0] sm:$0xff]  ;;  %v856_v10 = vpack.c.bf16 %v45_v2, %v44_v1  ;;  %v858_v14 = vpack.c.bf16 %v63_v7, %v62_v6 }
  0x12   :  { %851 = vmatprep.subr.bf16.mxu0 %v850_v52  ;;  %v95_v9 = vld [vmem:[%s1486_s1 + $0x1e8] sm:$0xff]  ;;  %v46_v11 = vld [vmem:[%s1486_s1 + $0x60] sm:$0xff]  ;;  %v888_v13 = vpack.c.bf16 %v77_v5, %v76_v3  ;;  %v64_v19 = vld [vmem:[%s1486_s1 + $0xf0] sm:$0xff] }
  0x13   :  { %881 = vmatpush3.bf16.msra.mxu1 %v880_v51  ;;  %v47_v12 = vld [vmem:[%s1486_s1 + $0x68] sm:$0xff]  ;;  %v78_v15 = vld [vmem:[%s1486_s1 + $0x160] sm:$0xff]  ;;  %v890_v18 = vpack.c.bf16 %v95_v9, %v94_v8  ;;  %v65_v20 = vld [vmem:[%s1486_s1 + $0xf8] sm:$0xff] }
  0x14   :  { %883 = vmatprep.subr.bf16.mxu1 %v882_v56  ;;  %v79_v16 = vld [vmem:[%s1486_s1 + $0x168] sm:$0xff]  ;;  %v29_v21 = vld [vmem:[%s1487_s0 + $0x18] sm:$0xff]  ;;  %v96_v22 = vld [vmem:[%s1486_s1 + $0x1f0] sm:$0xff]  ;;  %v860_v24 = vpack.c.bf16 %v47_v12, %v46_v11  ;;  %v862_v26 = vpack.c.bf16 %v65_v20, %v64_v19 }
  0x15   :  { %853 = vmatpush3.bf16.msra.mxu0 %v852_v62  ;;  %v27_v17 = vld [vmem:[%s1487_s0 + $0x8] sm:$0xff]  ;;  %v97_v23 = vld [vmem:[%s1486_s1 + $0x1f8] sm:$0xff]  ;;  %303 = vmatprep.mubr.f32.mxu1 %v29_v21  ;;  %v892_v25 = vpack.c.bf16 %v79_v16, %v78_v15  ;;  %v48_v27 = vld [vmem:[%s1486_s1 + $0x70] sm:$0xff] }
  0x16   :  { %855 = vmatprep.subr.bf16.mxu0 %v854_v0  ;;  %233 = vmatprep.mubr.f32.mxu0 %v27_v17  ;;  %v49_v28 = vld [vmem:[%s1486_s1 + $0x78] sm:$0xff]  ;;  %v80_v29 = vld [vmem:[%s1486_s1 + $0x170] sm:$0xff]  ;;  %v894_v30 = vpack.c.bf16 %v97_v23, %v96_v22  ;;  %v114_v32 = vld [vmem:[%s1486_s1 + $0x280] sm:$0xff] }
  0x17   :  { %885 = vmatpush3.bf16.msra.mxu1 %v884_v63  ;;  %v81_v31 = vld [vmem:[%s1486_s1 + $0x178] sm:$0xff]  ;;  %v115_v33 = vld [vmem:[%s1486_s1 + $0x288] sm:$0xff]  ;;  %v146_v34 = vld [vmem:[%s1486_s1 + $0x380] sm:$0xff]  ;;  %v864_v36 = vpack.c.bf16 %v49_v28, %v48_v27 }
  0x18   :  { %887 = vmatprep.subr.bf16.mxu1 %v886_v4  ;;  %v147_v35 = vld [vmem:[%s1486_s1 + $0x388] sm:$0xff]  ;;  %v896_v37 = vpack.c.bf16 %v81_v31, %v80_v29  ;;  %v898_v38 = vpack.c.bf16 %v115_v33, %v114_v32  ;;  %v98_v39 = vld [vmem:[%s1486_s1 + $0x200] sm:$0xff]  ;;  %v116_v44 = vld [vmem:[%s1486_s1 + $0x290] sm:$0xff] }
  0x19   :  { %857 = vmatpush3.bf16.msra.mxu0 %v856_v10  ;;  %v99_v40 = vld [vmem:[%s1486_s1 + $0x208] sm:$0xff]  ;;  %v130_v41 = vld [vmem:[%s1486_s1 + $0x300] sm:$0xff]  ;;  %v930_v42 = vpack.c.bf16 %v147_v35, %v146_v34  ;;  %v117_v45 = vld [vmem:[%s1486_s1 + $0x298] sm:$0xff] }
  0x1a   :  { %859 = vmatprep.subr.bf16.mxu0 %v858_v14  ;;  %v131_v43 = vld [vmem:[%s1486_s1 + $0x308] sm:$0xff]  ;;  %v148_v46 = vld [vmem:[%s1486_s1 + $0x390] sm:$0xff]  ;;  %v149_v47 = vld [vmem:[%s1486_s1 + $0x398] sm:$0xff]  ;;  %v900_v49 = vpack.c.bf16 %v99_v40, %v98_v39  ;;  %v902_v52 = vpack.c.bf16 %v117_v45, %v116_v44 }
  0x1b   :  { %889 = vmatpush3.bf16.msra.mxu1 %v888_v13  ;;  %v26_v48 = vld [vmem:[%s1487_s0] sm:$0xff]  ;;  %v28_v50 = vld [vmem:[%s1487_s0 + $0x10] sm:$0xff]  ;;  %v932_v51 = vpack.c.bf16 %v131_v43, %v130_v41  ;;  %v101_v54 = vld [vmem:[%s1486_s1 + $0x218] sm:$0xff]  ;;  %v934_v56 = vpack.c.bf16 %v149_v47, %v148_v46 }
  0x1c   :  { %891 = vmatprep.subr.bf16.mxu1 %v890_v18  ;;  %v100_v53 = vld [vmem:[%s1486_s1 + $0x210] sm:$0xff]  ;;  %v133_v57 = vld [vmem:[%s1486_s1 + $0x318] sm:$0xff]  ;;  %v118_v58 = vld [vmem:[%s1486_s1 + $0x2a0] sm:$0xff] }
  0x1d   :  { %861 = vmatpush3.bf16.msra.mxu0 %v860_v24  ;;  %v132_v55 = vld [vmem:[%s1486_s1 + $0x310] sm:$0xff]  ;;  %v119_v59 = vld [vmem:[%s1486_s1 + $0x2a8] sm:$0xff]  ;;  %v150_v60 = vld [vmem:[%s1486_s1 + $0x3a0] sm:$0xff]  ;;  %v904_v62 = vpack.c.bf16 %v101_v54, %v100_v53 }
  0x1e   :  { %863 = vmatprep.subr.bf16.mxu0 %v862_v26  ;;  %v151_v61 = vld [vmem:[%s1486_s1 + $0x3a8] sm:$0xff]  ;;  %v936_v63 = vpack.c.bf16 %v133_v57, %v132_v55  ;;  %v906_v0 = vpack.c.bf16 %v119_v59, %v118_v58  ;;  %v102_v1 = vld [vmem:[%s1486_s1 + $0x220] sm:$0xff]  ;;  %v120_v6 = vld [vmem:[%s1486_s1 + $0x2b0] sm:$0xff] }
  0x1f   :  { %893 = vmatpush3.bf16.msra.mxu1 %v892_v25  ;;  %v103_v2 = vld [vmem:[%s1486_s1 + $0x228] sm:$0xff]  ;;  %v134_v3 = vld [vmem:[%s1486_s1 + $0x320] sm:$0xff]  ;;  %v938_v4 = vpack.c.bf16 %v151_v61, %v150_v60  ;;  %v121_v7 = vld [vmem:[%s1486_s1 + $0x2b8] sm:$0xff] }
  0x20   :  { %895 = vmatprep.subr.bf16.mxu1 %v894_v30  ;;  %v135_v5 = vld [vmem:[%s1486_s1 + $0x328] sm:$0xff]  ;;  %v152_v8 = vld [vmem:[%s1486_s1 + $0x3b0] sm:$0xff]  ;;  %v153_v9 = vld [vmem:[%s1486_s1 + $0x3b8] sm:$0xff]  ;;  %v908_v10 = vpack.c.bf16 %v103_v2, %v102_v1  ;;  %v910_v12 = vpack.c.bf16 %v121_v7, %v120_v6 }
  0x21   :  { %865 = vmatpush3.bf16.msra.mxu0 %v864_v36  ;;  %v940_v11 = vpack.c.bf16 %v135_v5, %v134_v3  ;;  %v104_v13 = vld [vmem:[%s1486_s1 + $0x230] sm:$0xff]  ;;  %v105_v14 = vld [vmem:[%s1486_s1 + $0x238] sm:$0xff]  ;;  %v942_v16 = vpack.c.bf16 %v153_v9, %v152_v8  ;;  %v122_v18 = vld [vmem:[%s1486_s1 + $0x2c0] sm:$0xff] }
  0x22   :  { %899 = vmatprep.subr.bf16.mxu0 %v898_v38  ;;  %v136_v15 = vld [vmem:[%s1486_s1 + $0x330] sm:$0xff]  ;;  %v137_v17 = vld [vmem:[%s1486_s1 + $0x338] sm:$0xff]  ;;  %v123_v19 = vld [vmem:[%s1486_s1 + $0x2c8] sm:$0xff]  ;;  %v912_v22 = vpack.c.bf16 %v105_v14, %v104_v13 }
  0x23   :  { %897 = vmatpush3.bf16.msra.mxu1 %v896_v37  ;;  %v154_v20 = vld [vmem:[%s1486_s1 + $0x3c0] sm:$0xff]  ;;  %v155_v21 = vld [vmem:[%s1486_s1 + $0x3c8] sm:$0xff]  ;;  %v33_v24 = vld [vmem:[%s1487_s0 + $0x38] sm:$0xff]  ;;  %v944_v25 = vpack.c.bf16 %v137_v17, %v136_v15  ;;  %v914_v26 = vpack.c.bf16 %v123_v19, %v122_v18  ;;  %v985_v15 = vmov 0.0  }
  0x24   :  { %931 = vmatprep.subr.bf16.mxu1 %v930_v42  ;;  %234 = vmatmul.mubr.f32.vlgmr.msra.gmra.mrb[0].mxu0 %v26_v48  ;;  %v31_v23 = vld [vmem:[%s1487_s0 + $0x28] sm:$0xff]  ;;  %v106_v27 = vld [vmem:[%s1486_s1 + $0x240] sm:$0xff]  ;;  %v946_v30 = vpack.c.bf16 %v155_v21, %v154_v20  ;;  %v124_v32 = vld [vmem:[%s1486_s1 + $0x2d0] sm:$0xff] }
  0x25   :  { %901 = vmatpush3.bf16.msra.mxu0 %v900_v49  ;;  %v107_v28 = vld [vmem:[%s1486_s1 + $0x248] sm:$0xff]  ;;  %v138_v29 = vld [vmem:[%s1486_s1 + $0x340] sm:$0xff]  ;;  %v125_v33 = vld [vmem:[%s1486_s1 + $0x2d8] sm:$0xff]  ;;  %373 = vmatprep.mubr.f32.mxu0 %v31_v23 }
  0x26   :  { %304 = vmatmul.mubr.f32.vlgmr.msra.gmra.mrb[0].mxu1 %v28_v50  ;;  %903 = vmatprep.subr.bf16.mxu0 %v902_v52  ;;  %v139_v31 = vld [vmem:[%s1486_s1 + $0x348] sm:$0xff]  ;;  %v156_v34 = vld [vmem:[%s1486_s1 + $0x3d0] sm:$0xff]  ;;  %v157_v35 = vld [vmem:[%s1486_s1 + $0x3d8] sm:$0xff]  ;;  %v916_v36 = vpack.c.bf16 %v107_v28, %v106_v27  ;;  %v918_v38 = vpack.c.bf16 %v125_v33, %v124_v32 }
  0x27   :  { %933 = vmatpush3.bf16.msra.mxu1 %v932_v51  ;;  %443 = vmatprep.mubr.f32.mxu1 %v33_v24  ;;  %v948_v37 = vpack.c.bf16 %v139_v31, %v138_v29  ;;  %v108_v39 = vld [vmem:[%s1486_s1 + $0x250] sm:$0xff]  ;;  %v109_v40 = vld [vmem:[%s1486_s1 + $0x258] sm:$0xff]  ;;  %v950_v42 = vpack.c.bf16 %v157_v35, %v156_v34  ;;  %v126_v44 = vld [vmem:[%s1486_s1 + $0x2e0] sm:$0xff] }
  0x28   :  { %935 = vmatprep.subr.bf16.mxu1 %v934_v56  ;;  %v140_v41 = vld [vmem:[%s1486_s1 + $0x350] sm:$0xff]  ;;  %v141_v43 = vld [vmem:[%s1486_s1 + $0x358] sm:$0xff]  ;;  %v127_v45 = vld [vmem:[%s1486_s1 + $0x2e8] sm:$0xff]  ;;  %v920_v48 = vpack.c.bf16 %v109_v40, %v108_v39 }
  0x29   :  { %905 = vmatpush3.bf16.msra.mxu0 %v904_v62  ;;  %v158_v46 = vld [vmem:[%s1486_s1 + $0x3e0] sm:$0xff]  ;;  %v159_v47 = vld [vmem:[%s1486_s1 + $0x3e8] sm:$0xff]  ;;  %v952_v49 = vpack.c.bf16 %v141_v43, %v140_v41  ;;  %v922_v50 = vpack.c.bf16 %v127_v45, %v126_v44  ;;  %v128_v56 = vld [vmem:[%s1486_s1 + $0x2f0] sm:$0xff]  ;;  %v620_v45 = vlaneseq }
  0x2a   :  { %907 = vmatprep.subr.bf16.mxu0 %v906_v0  ;;  %v110_v51 = vld [vmem:[%s1486_s1 + $0x260] sm:$0xff]  ;;  %v111_v52 = vld [vmem:[%s1486_s1 + $0x268] sm:$0xff]  ;;  %v954_v54 = vpack.c.bf16 %v159_v47, %v158_v46  ;;  %v129_v57 = vld [vmem:[%s1486_s1 + $0x2f8] sm:$0xff] }
  0x2b   :  { %937 = vmatpush3.bf16.msra.mxu1 %v936_v63  ;;  %v142_v53 = vld [vmem:[%s1486_s1 + $0x360] sm:$0xff]  ;;  %v143_v55 = vld [vmem:[%s1486_s1 + $0x368] sm:$0xff]  ;;  %v160_v58 = vld [vmem:[%s1486_s1 + $0x3f0] sm:$0xff]  ;;  %v924_v60 = vpack.c.bf16 %v111_v52, %v110_v51  ;;  %v926_v62 = vpack.c.bf16 %v129_v57, %v128_v56  ;;  %v621_v46 = vand.u32 127, %v620_v45 }
  0x2c   :  { %939 = vmatprep.subr.bf16.mxu1 %v938_v4  ;;  %v161_v59 = vld [vmem:[%s1486_s1 + $0x3f8] sm:$0xff]  ;;  %v956_v61 = vpack.c.bf16 %v143_v55, %v142_v53  ;;  %v112_v63 = vld [vmem:[%s1486_s1 + $0x270] sm:$0xff]  ;;  %v30_v6 = vld [vmem:[%s1487_s0 + $0x20] sm:$0xff] }
  0x2d   :  { %909 = vmatpush3.bf16.msra.mxu0 %v908_v10  ;;  %v113_v0 = vld [vmem:[%s1486_s1 + $0x278] sm:$0xff]  ;;  %v958_v1 = vpack.c.bf16 %v161_v59, %v160_v58  ;;  %v144_v2 = vld [vmem:[%s1486_s1 + $0x370] sm:$0xff]  ;;  %v450_v8 = vld [vmem:[%s1488_s3] sm:$0xff]  ;;  %vm623_vm2 = vcmp.lt.s32.totalorder %v621_v46, 10  ;;  %vm629_vm3 = vcmp.ge.s32.totalorder %v621_v46, 10  ;;  %vm630_vm4 = vcmp.lt.s32.totalorder %v621_v46, 15 }
  0x2e   :  { %911 = vmatprep.subr.bf16.mxu0 %v910_v12  ;;  %v145_v3 = vld [vmem:[%s1486_s1 + $0x378] sm:$0xff]  ;;  %v928_v4 = vpack.c.bf16 %v113_v0, %v112_v63  ;;  %v32_v7 = vld [vmem:[%s1487_s0 + $0x30] sm:$0xff]  ;;  %v451_v9 = vld [vmem:[%s1488_s3 + $0x8] sm:$0xff] }
  0x2f   :  { %941 = vmatpush3.bf16.msra.mxu1 %v940_v11  ;;  %v960_v5 = vpack.c.bf16 %v145_v3, %v144_v2  ;;  %v963_v10 = vpack.c.bf16 %v451_v9, %v450_v8  ;;  %v983_v11 = vmov 0.0|0.0   ;;  %v452_v12 = vld [vmem:[%s1488_s3 + $0x10] sm:$0xff]  ;;  %v453_v13 = vld [vmem:[%s1488_s3 + $0x18] sm:$0xff]  ;;  %v537_v17 = vld [vmem:[%s1489_s5 + $0x8] sm:$0xff] }
  0x30   :  { %943 = vmatprep.subr.bf16.mxu1 %v942_v16  ;;  %v966_v14 = vpack.c.bf16 %v453_v13, %v452_v12  ;;  %v536_v16 = vld [vmem:[%s1489_s5] sm:$0xff]  ;;  %vm1468_vm5 = vmand %vm629_vm3, %vm630_vm4 }
  0x31   :  { %913 = vmatpush3.bf16.msra.mxu0 %v912_v22  ;;  %v969_v18 = vpack.c.bf16 %v537_v17, %v536_v16  ;;  %v657_v20 = vld [vmem:[%s1490_s2] ss:$0 sm:$0xff] }
  0x32   :  { %915 = vmatprep.subr.bf16.mxu0 %v914_v26  ;;  %v658_v40 = vld [vmem:[%s1491_s4] ss:$0 sm:$0xff] }
  0x33   :  { %945 = vmatpush3.bf16.msra.mxu1 %v944_v25  ;;  %v660_v47 = vld [vmem:[%s1492_s6] ss:$0 sm:$0xff] }
  0x34   :  { %947 = vmatprep.subr.bf16.mxu1 %v946_v30 }
  0x35   :  { %917 = vmatpush3.bf16.msra.mxu0 %v916_v36 }
  0x36   :  { %919 = vmatprep.subr.bf16.mxu0 %v918_v38  ;;  %v539_v38 = vld [vmem:[%s1489_s5 + $0x18] sm:$0xff] }
  0x37   :  { %949 = vmatpush3.bf16.msra.mxu1 %v948_v37  ;;  %v538_v37 = vld [vmem:[%s1489_s5 + $0x10] sm:$0xff] }
  0x38   :  { %951 = vmatprep.subr.bf16.mxu1 %v950_v42  ;;  %v972_v39 = vpack.c.bf16 %v539_v38, %v538_v37 }
  0x39   :  { %921 = vmatpush3.bf16.msra.mxu0 %v920_v48 }
  0x3a   :  { %923 = vmatprep.subr.bf16.mxu0 %v922_v50 }
  0x3b   :  { %953 = vmatpush3.bf16.msra.mxu1 %v952_v49 }
  0x3c   :  { %955 = vmatprep.subr.bf16.mxu1 %v954_v54 }
  0x3d   :  { %925 = vmatpush3.bf16.msra.mxu0 %v924_v60 }
  0x3e   :  { %927 = vmatprep.subr.bf16.mxu0 %v926_v62 }
  0x3f   :  { %957 = vmatpush3.bf16.msra.mxu1 %v956_v61 }
  0x40   :  { %959 = vmatprep.subr.bf16.mxu1 %v958_v1 }
  0x41   :  { %929 = vmatpush3.bf16.msra.mxu0 %v928_v4 }
  0x42   :  { %962 = vmatprep.subr.bf16.mxu0 %v983_v11 }
  0x43   :  { %961 = vmatpush3.bf16.msra.mxu1 %v960_v5 }
  0x44   :  { %374 = vmatmul.mubr.f32.vlgmr.msra.gmra.mrb[2].mxu0 %v30_v6  ;;  %968 = vmatprep.subr.bf16.mxu1 %v983_v11 }
  0x45   :  { %964 = vmatpush3.bf16.msra.mxu0 %v963_v10  ;;  %820 = vmatprep.mubr.msk.f32.mxu0 %vm984_vm0, %v985_v15 }
  0x46   :  { %444 = vmatmul.mubr.f32.vlgmr.msra.gmra.mrb[2].mxu1 %v32_v7  ;;  %965 = vmatprep.subr.bf16.mxu0 %v983_v11 }
  0x47   :  { %831 = vmatprep.mubr.msk.f32.mxu1 %vm984_vm0, %v985_v15  ;;  %970 = vmatpush3.bf16.msra.mxu1 %v969_v18 }
  0x48   :  { %971 = vmatprep.subr.bf16.mxu1 %v983_v11 }
  0x49   :  { %967 = vmatpush3.bf16.msra.mxu0 %v966_v14 }
  0x4b   :  { %973 = vmatpush3.bf16.msra.mxu1 %v972_v39 }
  0xf7   :  { %v694_v19 = vpop.f32.mrb[0].mxu0 }
  0xf8   :  { %v695_v21 = vpop.f32.mrb[1].mxu0 }
  0xf9   :  { %v729_v22 = vpop.f32.mrb[0].mxu1  ;;  %v696_v23 = vadd.f32 %v695_v21, %v694_v19 }
  0xfa   :  { %v730_v24 = vpop.f32.mrb[1].mxu1 }
  0xfb   :  { %v731_v25 = vadd.f32 %v730_v24, %v729_v22  ;;  %v236_v26 = vadd.f32 %v696_v23, %v657_v20 }
  0xfd   :  { %v306_v27 = vadd.f32 %v731_v25, %v236_v26 }
 0x117   :  { %v764_v28 = vpop.f32.mrb[2].mxu0 }
 0x118   :  { %v765_v29 = vpop.f32.mrb[3].mxu0 }
 0x119   :  { %v799_v30 = vpop.f32.mrb[2].mxu1  ;;  %v766_v31 = vadd.f32 %v765_v29, %v764_v28 }
 0x11a   :  { %v800_v32 = vpop.f32.mrb[3].mxu1 }
 0x11b   :  { %v801_v33 = vadd.f32 %v800_v32, %v799_v30  ;;  %v376_v34 = vadd.f32 %v766_v31, %v306_v27 }
 0x11d   :  { %v446_v35 = vadd.f32 %v801_v33, %v376_v34 }
 0x11f   :  { %v449_v36 = vmax.f32 %v446_v35, 0.0 }
 0x121   :  { %821 = vmatmul.mubr.msk.f32.vlgmr.msra.gmra.mrb[4].mxu0 %vm461_vm1, %v449_v36 }
 0x1f4   :  { %v531_v41 = vpop.f32.mrb[4].mxu0 }
 0x1f5   :  { %v532_v42 = vadd.f32 %v658_v40, %v531_v41  ;;  %v822_v43 = vpop.f32.mrb[5].mxu0 }
 0x1f7   :  { %v535_v44 = vmax.f32 %v532_v42, 0.0 }
 0x1f9   :  { %832 = vmatmul.mubr.msk.f32.vlgmr.msra.gmra.mrb[4].mxu1 %vm461_vm1, %v535_v44 }
 0x2cc   :  { %v616_v48 = vpop.f32.mrb[4].mxu1 }
 0x2cd   :  { %v617_v49 = vadd.f32 %v660_v47, %v616_v48  ;;  %v833_v50 = vpop.f32.mrb[5].mxu1 }
 0x2cf   :  { %v625_v51 = vsel %vm623_vm2, %v617_v49, -1e+30  ;;  %v632_v53 = vsel %vm1468_vm5, %v617_v49, -1e+30 }
 0x2d0   :  { %626 = vmax.xlane.f32.xlu0 %v625_v51 }
 0x2d4   :  { %633 = vmax.xlane.f32.xlu0 %v632_v53 }
 0x35d   :  { %v627_v54 = vpop.xlane.xlu0 %626 }
 0x35e   :  { %v628_v55 = vsel %vm623_vm2, %v627_v54, 0.0 }
 0x361   :  { %v634_v56 = vpop.xlane.xlu0 %633 }
 0x362   :  { %v635_v57 = vsel %vm1468_vm5, %v634_v56, %v628_v55 }
 0x363   :  { %v636_v58 = vsub.f32 %v617_v49, %v635_v57 }
 0x365   :  { %v637_v59 = vsel %vm630_vm4, %v636_v58, -1e+30 }
 0x366   :  { %v638_v60 = vmul.f32 1.442695, %v637_v59 }
 0x368   :  { %977 = vpow2.f32 %v638_v60 }
 0x372   :  { %v978_v61 = vpop.eup %977 }
 0x373   :  { %v640_v62 = vsel %vm623_vm2, %v978_v61, 0.0  ;;  %v646_v63 = vsel %vm1468_vm5, %v978_v61, 0.0 }
 0x374   :  { %641 = vadd.xlane.f32.xlu1 %v640_v62 }
 0x378   :  { %647 = vadd.xlane.f32.xlu1 %v646_v63 }
 0x401   :  { %v642_v0 = vpop.xlane.xlu1 %641 }
 0x402   :  { %979 = vrcp.f32 %v642_v0 }
 0x405   :  { %v648_v1 = vpop.xlane.xlu1 %647 }
 0x406   :  { %981 = vrcp.f32 %v648_v1 }
 0x40c   :  { %v980_v2 = vpop.eup %979 }
 0x40d   :  { %v644_v3 = vmul.f32 %v980_v2, %v978_v61 }
 0x40f   :  { %v645_v6 = vsel %vm623_vm2, %v644_v3, 0.0 }
 0x410   :  { %v982_v4 = vpop.eup %981 }
 0x411   :  { %v650_v5 = vmul.f32 %v982_v4, %v978_v61 }
 0x413   :  { %v651_v7 = vsel %vm1468_vm5, %v650_v5, %v645_v6 }
 0x414   :  { %652 = vst [vmem:[%s1493_s7] sm:$0xff] %v651_v7 }

</bundles_post_ra>
